<compile_context>
chip_gen: v5e
topology: v5e:2x2
jax: 0.10.0
libtpu: 0.0.40
codegen_flags: <defaults>
</compile_context>

<pallas_src>
import jax
import jax.numpy as jnp
from jax.experimental import pallas as pl
from jax.experimental.pallas import tpu as pltpu

IN_FEATURES = 53
OUT_FEATURES = 41
LANES = 128  # lane-dense padded output width (full vreg lane width)


def _round_up(x, m):
    return ((x + m - 1) // m) * m


def au_detector_kernel(x_ref, w_ref, b_ref, o_ref):
    # x_ref: (TB, 53)  w_ref: (53, 128) zero-padded  b_ref: (1, 128)  o_ref: (TB, 128)
    z = jnp.dot(x_ref[...], w_ref[...], preferred_element_type=jnp.float32) + b_ref[...]
    # Exact sigmoid (exp on EUP, one exact divide) -- approx reciprocal was not
    # accurate enough for the 1e-3 correctness tolerance.
    o_ref[...] = jax.nn.sigmoid(z).astype(o_ref.dtype)


def prepare_params(weight, bias):
    """One-time (init-time) param prep: transpose to (53, 41) and zero-pad the
    output dim to 128 lanes so the kernel's store path is lane-dense."""
    w_padded = jnp.zeros((IN_FEATURES, LANES), jnp.float32)
    w_padded = w_padded.at[:, :OUT_FEATURES].set(weight.T.astype(jnp.float32))
    b_padded = jnp.zeros((1, LANES), jnp.float32)
    b_padded = b_padded.at[:, :OUT_FEATURES].set(bias.astype(jnp.float32))
    return w_padded, b_padded


def au_detector_forward(features, w_padded, b_padded, *, max_tile=4096):
    """features: (B, 53) f32, w_padded: (53, 128), b_padded: (1, 128) -> (B, 41) f32.

    Batch is tiled into TB-row blocks (TB multiple of 8, capped at max_tile).
    Weight/bias use a constant index_map so they stay resident in VMEM across
    grid steps; only the activations stream through the pipeline.
    """
    B = features.shape[0]
    TB = min(max_tile, _round_up(B, 8))
    B_pad = _round_up(B, TB)
    if B_pad != B:
        features = jnp.pad(features, ((0, B_pad - B), (0, 0)))

    out = pl.pallas_call(
        au_detector_kernel,
        out_shape=jax.ShapeDtypeStruct((B_pad, LANES), jnp.float32),
        grid=(B_pad // TB,),
        in_specs=[
            pl.BlockSpec((TB, IN_FEATURES), lambda i: (i, 0)),
            pl.BlockSpec((IN_FEATURES, LANES), lambda i: (0, 0)),
            pl.BlockSpec((1, LANES), lambda i: (0, 0)),
        ],
        out_specs=pl.BlockSpec((TB, LANES), lambda i: (i, 0)),
        compiler_params=pltpu.CompilerParams(
            dimension_semantics=("parallel",),
        ),
    )(features, w_padded, b_padded)

    return out[:B, :OUT_FEATURES]


def init_params(key):
    """Deterministic init matching nn.Linear(53, 41) default:
    U(-1/sqrt(in), 1/sqrt(in)) for both weight and bias."""
    kw, kb = jax.random.split(key)
    bound = 1.0 / (IN_FEATURES ** 0.5)
    weight = jax.random.uniform(
        kw, (OUT_FEATURES, IN_FEATURES), jnp.float32, minval=-bound, maxval=bound
    )
    bias = jax.random.uniform(
        kb, (OUT_FEATURES,), jnp.float32, minval=-bound, maxval=bound
    )
    return weight, bias


if __name__ == "__main__":
    key = jax.random.PRNGKey(0)
    k_params, k_x1, k_x2 = jax.random.split(key, 3)
    weight, bias = init_params(k_params)
    w_padded, b_padded = prepare_params(weight, bias)

    # Small batch (single tile).
    B = 8
    features = jax.random.normal(k_x1, (B, IN_FEATURES), jnp.float32)
    out = au_detector_forward(features, w_padded, b_padded)
    out = jax.block_until_ready(out)

    ref = jax.nn.sigmoid(features @ weight.T + bias)
    assert out.shape == (B, OUT_FEATURES)
    assert jnp.allclose(out, ref, atol=1e-3, rtol=1e-3)

    # Multi-tile + ragged batch (exercises grid pipelining and host padding).
    B2 = 300
    features2 = jax.random.normal(k_x2, (B2, IN_FEATURES), jnp.float32)
    out2 = au_detector_forward(features2, w_padded, b_padded, max_tile=256)
    out2 = jax.block_until_ready(out2)

    ref2 = jax.nn.sigmoid(features2 @ weight.T + bias)
    assert out2.shape == (B2, OUT_FEATURES)
    assert jnp.allclose(out2, ref2, atol=1e-3, rtol=1e-3)

    print("KERNEL_OK")
</pallas_src>

<mosaic_0001>
module attributes {stable_mosaic.version = 11 : i64} {
  func.func @au_detector_kernel(%arg0: i32, %arg1: memref<8x53xf32, #tpu.memory_space<vmem>>, %arg2: memref<53x128xf32, #tpu.memory_space<vmem>>, %arg3: memref<1x128xf32, #tpu.memory_space<vmem>>, %arg4: memref<8x128xf32, #tpu.memory_space<vmem>>) attributes {dimension_semantics = [#tpu.dimension_semantics<parallel>], iteration_bounds = array<i64: 1>, scalar_prefetch = 0 : i64, scratch_operands = 0 : i64, tpu.core_type = #tpu.core_type<tc>, window_params = [{transform_indices = @transform_0, window_bounds = array<i64: 8, 53>}, {pipeline_mode = #tpu.pipeline_mode<synchronous>, transform_indices = @transform_1, window_bounds = array<i64: 53, 128>}, {pipeline_mode = #tpu.pipeline_mode<synchronous>, transform_indices = @transform_2, window_bounds = array<i64: 1, 128>}, {transform_indices = @transform_3, window_bounds = array<i64: 8, 128>}]} {
    %c0 = arith.constant 0 : index
    %c0_0 = arith.constant 0 : index
    %0 = vector.load %arg1[%c0, %c0_0] : memref<8x53xf32, #tpu.memory_space<vmem>>, vector<8x53xf32>
    %c0_1 = arith.constant 0 : index
    %c0_2 = arith.constant 0 : index
    %1 = vector.load %arg2[%c0_1, %c0_2] : memref<53x128xf32, #tpu.memory_space<vmem>>, vector<53x128xf32>
    %cst = arith.constant dense<0.000000e+00> : vector<8x128xf32>
    %2 = tpu.matmul %0, %1, %cst {dimension_numbers = #tpu.dot_dimension_numbers<[1], [0], [0], [1], [0, 0, 1, 1], [], []>} : vector<8x53xf32>, vector<53x128xf32>, vector<8x128xf32> -> vector<8x128xf32>
    %c0_3 = arith.constant 0 : index
    %c0_4 = arith.constant 0 : index
    %3 = vector.load %arg3[%c0_3, %c0_4] : memref<1x128xf32, #tpu.memory_space<vmem>>, vector<1x128xf32>
    %4 = vector.broadcast %3 : vector<1x128xf32> to vector<8x128xf32>
    %5 = arith.addf %2, %4 : vector<8x128xf32>
    %6 = arith.negf %5 : vector<8x128xf32>
    %7 = math.exp %6 : vector<8x128xf32>
    %cst_5 = arith.constant 1.000000e+00 : f32
    %8 = vector.broadcast %cst_5 : f32 to vector<8x128xf32>
    %9 = arith.addf %8, %7 : vector<8x128xf32>
    %10 = arith.divf %8, %9 : vector<8x128xf32>
    %c0_6 = arith.constant 0 : index
    %c0_7 = arith.constant 0 : index
    %11 = vector.load %arg4[%c0_6, %c0_7] : memref<8x128xf32, #tpu.memory_space<vmem>>, vector<8x128xf32>
    tpu.vector_store %arg4[%c0_6, %c0_7], %10 {strides = array<i32>} : memref<8x128xf32, #tpu.memory_space<vmem>>, vector<8x128xf32>,
    return
  }
  func.func @transform_0(%arg0: i32) -> (i32, i32) {
    %c0_i32 = arith.constant 0 : i32
    %c0_i32_0 = arith.constant 0 : i32
    return %arg0, %c0_i32 : i32, i32
  }
  func.func @transform_1(%arg0: i32) -> (i32, i32) {
    %c0_i32 = arith.constant 0 : i32
    %c0_i32_0 = arith.constant 0 : i32
    %c0_i32_1 = arith.constant 0 : i32
    return %c0_i32, %c0_i32_0 : i32, i32
  }
  func.func @transform_2(%arg0: i32) -> (i32, i32) {
    %c0_i32 = arith.constant 0 : i32
    %c0_i32_0 = arith.constant 0 : i32
    %c0_i32_1 = arith.constant 0 : i32
    return %c0_i32, %c0_i32_0 : i32, i32
  }
  func.func @transform_3(%arg0: i32) -> (i32, i32) {
    %c0_i32 = arith.constant 0 : i32
    %c0_i32_0 = arith.constant 0 : i32
    return %arg0, %c0_i32 : i32, i32
  }
}

</mosaic_0001>

<bundles_post_ra>
// kernel: tpu_custom_call.1
= control target key start
LH: loop header
LB: loop body
LE: loop exit
PB: predicated region body
PF: predicated region fallthrough
CT: control target
= control target key end

     0   :  { %8 = vsyncpa [#allocation3], 0  ;;  %s251_s0 = inlined_call_operand.hbm [shape: f32[8,53], index: 0, kind: input, shape index: {}]   ;;  %s252_s1 = inlined_call_operand.hbm [shape: f32[53,128], index: 1, kind: input, shape index: {}]   ;;  %s253_s2 = inlined_call_operand.vmem [shape: f32[1,128], index: 2, kind: input, shape index: {}]   ;;  %s254_s3 = inlined_call_operand.hbm [shape: f32[8,128], index: 3, kind: output, shape index: {}]  }
   0x1   :  { %9 = vsyncpa [#allocation6], 0 }
   0x2   :  { %10 = vsyncpa [#allocation4], 0  ;;  %s16_s14 = sshll.u32 %s251_s0, 4  ;;  %s214_s15 = smov [#allocation2]   ;;  %s17_s14 = int_to_ptr.hbm [resolvable:$true] %s16_s14 }
   0x3   :  { %s18_s16 = sshll.u32 %s214_s15, 4  ;;  %s26_s19 = sshll.u32 %s252_s1, 4  ;;  %s19_s16 = int_to_ptr.vmem [resolvable:$true] %s18_s16  ;;  %s27_s19 = int_to_ptr.hbm [resolvable:$true] %s26_s19 }
   0x4   :  { %21 = dma.hbm_to_vmem [thread:$0]  %s17_s14, 128, %s19_s16, [#allocation3]  }
   0x5   :  { %s215_s20 = smov [#allocation5]   ;;  %s216_s22 = smov 128  }
   0x6   :  { %s28_s21 = sshll.u32 %s215_s20, 4  ;;  %s217_s23 = smov 8   ;;  %s29_s21 = int_to_ptr.vmem [resolvable:$true] %s28_s21 }
   0x7   :  { %34 = dma.hbm_to_vmem [thread:$0]  %s27_s19, 896, %s29_s21, [#allocation6], %s216_s22, %s216_s22, %s217_s23  }
   0x8   :  { %208 = dma.done.wait [#allocation3], 128  }
   0x9   :  { %209 = vsyncadd [#allocation3], 4294967168 }
   0xa   :  { %210 = dma.done.wait [#allocation6], 896  }
   0xb   :  { %211 = vsyncadd [#allocation6], 4294966400  ;;  %vm61_vm0 = vcmask 1044480   ;;  %v52_v0 = vld [vmem:[#allocation5 + $0x30] sm:$0x1f]  ;;  %v51_v1 = vld [vmem:[#allocation5 + $0x28] sm:$0xff] }
   0xc   :  { %123 = vmatpush.msk.msra.mxu0 %vm61_vm0, %v52_v0  ;;  %v50_v2 = vld [vmem:[#allocation5 + $0x20] sm:$0xff]  ;;  %v49_v3 = vld [vmem:[#allocation5 + $0x18] sm:$0xff]  ;;  %v48_v4 = vld [vmem:[#allocation5 + $0x10] sm:$0xff]  ;;  %vm57_vm1 = vcmask 433152   ;;  %s218_s24 = smov [#allocation7]  }
   0xd   :  { %v47_v5 = vld [vmem:[#allocation5 + $0x8] sm:$0xff]  ;;  %v46_v6 = vld [vmem:[#allocation5] sm:$0xff]  ;;  %v45_v7 = vld [vmem:[#allocation2] sm:$0xff]  ;;  %s110_s25 = sshll.u32 %s218_s24, 4  ;;  %s111_s25 = int_to_ptr.vmem [resolvable:$true] %s110_s25 }
   0xe   :  { %75 = vmatpush.msra.mxu0 %v51_v1  ;;  %v131_v8 = vld [vmem:[%s253_s2] ss:$0 sm:$0xff]  ;;  %s112_s2 = sshll.u32 %s254_s3, 4  ;;  %s113_s2 = int_to_ptr.hbm [resolvable:$true] %s112_s2 }
  0x10   :  { %76 = vmatpush.msra.mxu0 %v50_v2 }
  0x12   :  { %77 = vmatpush.msra.mxu0 %v49_v3 }
  0x14   :  { %78 = vmatpush.msra.mxu0 %v48_v4 }
  0x16   :  { %79 = vmatpush.msra.mxu0 %v47_v5 }
  0x18   :  { %80 = vmatpush.msra.mxu0 %v46_v6 }
  0x19   :  { %124 = vmatmul.msk.f32.vlgmr.msra.gmra.mxu0 %vm57_vm1, %v45_v7 }
  0x96   :  { %v82_v9 = vpop.f32.mrf.mxu0 }
  0x97   :  { %v83_v10 = vadd.f32 %v131_v8, %v82_v9 }
  0x99   :  { %v125_v11 = vmul.f32 -1.442695, %v83_v10 }
  0x9b   :  { %132 = vpow2.f32 %v125_v11 }
  0xa1   :  { %v133_v12 = vpop.eup %132 }
  0xa2   :  { %v88_v13 = vadd.f32 1.0, %v133_v12 }
  0xa4   :  { %134 = vrcp.f32 %v88_v13  ;;  %v100_v17 = vand.u32 2147483648, %v88_v13  ;;  %v98_v19 = vand.u32 2147483647, %v88_v13  ;;  %vm94_vm3 = vweird.f32 %v88_v13 }
  0xa6   :  { %v101_v21 = vor.u32 1.1754944e-38, %v100_v17  ;;  %vm99_vm5 = vcmp.eq.f32.partialorder %v98_v19, 8.507059e+37 }
  0xaa   :  { %v135_v14 = vpop.eup %134 }
  0xab   :  { %v90_v15 = vmul.f32 %v135_v14, %v88_v13  ;;  %vm95_vm2 = vweird.f32 %v135_v14 }
  0xac   :  { %vm96_vm4 = vmor %vm94_vm3, %vm95_vm2 }
  0xad   :  { %v91_v16 = vsub.f32 1.0, %v90_v15 }
  0xaf   :  { %v92_v18 = vmul.f32 %v135_v14, %v91_v16 }
  0xb1   :  { %v93_v20 = vadd.f32 %v135_v14, %v92_v18 }
  0xb3   :  { %v97_v22 = vsel %vm96_vm4, %v135_v14, %v93_v20 }
  0xb4   :  { %v102_v23 = vsel %vm99_vm5, %v101_v21, %v97_v22 }
  0xb5   :  { %104 = vst [vmem:[#allocation7] sm:$0xff] %v102_v23 }
  0xb6   :  { %115 = dma.vmem_to_hbm [thread:$0]  %s111_s25, 128, %s113_s2, [#allocation4]  }
  0xb7   :  { %212 = dma.done.wait [#allocation4], 128  }
  0xb8   :  { %213 = vsyncadd [#allocation4], 4294967168 }
  0xb9   :  { %120 = vsyncpa [#allocation3], 1 }
  0xba   :  { %121 = vsyncpa [#allocation6], 1 }
  0xbb   :  { %122 = vsyncpa [#allocation4], 1 }

</bundles_post_ra>
